<compile_context>
chip_gen: v7x
topology: tpu7x:2x2x1
jax: 0.10.0
libtpu: 0.0.40
codegen_flags: <defaults>
</compile_context>

<pallas_src>
import math

import jax
import jax.numpy as jnp
import numpy as np
from jax.experimental import pallas as pl
from jax.experimental.pallas import tpu as pltpu

# ---- problem sizes (consistent with the module) ----
B, S, H = 2, 8, 32          # batch, seq, num_hiddens
NUM_HEADS = 4
D_HEAD = H // NUM_HEADS
FFN_H = 64                  # ffn_num_hiddens
EPS = 1e-5                  # PyTorch LayerNorm default


def _layernorm(x, gamma, beta):
    mu = jnp.mean(x, axis=-1, keepdims=True)
    var = jnp.mean((x - mu) ** 2, axis=-1, keepdims=True)
    return (x - mu) * jax.lax.rsqrt(var + EPS) * gamma + beta


def encoder_block_kernel(
    vl_ref,          # scalar prefetch (SMEM): (B,) int32 valid lens
    x_ref,           # (nb, S, H)          f32  token-major X block
    wqkv_ref,        # (nb, 3H, H)         bf16 fused [Wq^T;Wk^T;Wv^T] (replicated per batch)
    woh_ref,         # (nb*NUM_HEADS, D_HEAD, H) bf16 per-(batch,head) W_o
    w1_ref,          # (H, FFN_H)          bf16
    w2_ref,          # (FFN_H, H)          bf16
    pslab_ref,       # (8, FFN_H)          f32  rows: g1,beta1,b1,b2,g2,beta2,0,0
    o_ref,           # (nb, S, H)          f32
):
    f32, bf16 = jnp.float32, jnp.bfloat16
    nb = x_ref.shape[0]                   # batch rows handled by this grid step
    G = nb * NUM_HEADS                    # combined (batch, head) matmul-batch dim
    scale = 1.0 / math.sqrt(D_HEAD)
    b0 = pl.program_id(0) * nb            # first global batch index of this block

    x = x_ref[...]                                                  # (nb,S,H) f32
    x_bf = x.astype(bf16)

    # ---- fused Q/K/V projection: one batched matmul over the block ----
    qkv = jax.lax.dot_general(
        wqkv_ref[...], x_bf, (((2,), (2,)), ((0,), (0,))),
        preferred_element_type=f32)                                 # (nb, 3H, S)
    # Leading-dim slices/reshapes only; g = b*NUM_HEADS + h ordering.
    q = qkv[:, 0:H].reshape(G, D_HEAD, S).astype(bf16)              # (G, DH, S)
    k = qkv[:, H:2 * H].reshape(G, D_HEAD, S).astype(bf16)          # (G, DH, S)
    v = qkv[:, 2 * H:3 * H].reshape(G, D_HEAD, S).astype(bf16)      # (G, DH, S)

    # ---- scores, batched over (batch, head) ----
    scores = jax.lax.dot_general(
        q, k, (((1,), (1,)), ((0,), (0,))),
        preferred_element_type=f32) * scale                         # (G, S, S)

    # d2l masked_softmax: key positions >= valid_len get -1e6.
    key_ids = jax.lax.broadcasted_iota(jnp.int32, (S, S), 1)        # (S, S)
    masks_b = [key_ids < vl_ref[b0 + b] for b in range(nb)]         # nb x (S,S)
    mask = jnp.stack([masks_b[g // NUM_HEADS] for g in range(G)], axis=0)  # (G,S,S)
    scores = jnp.where(mask, scores, -1e6)
    scores = scores - jnp.max(scores, axis=-1, keepdims=True)
    p = jnp.exp(scores)
    p = p * pl.reciprocal(jnp.sum(p, axis=-1, keepdims=True), approx=True)

    # ---- attention context and per-head output projection ----
    ctx = jax.lax.dot_general(
        p.astype(bf16), v, (((2,), (2,)), ((0,), (0,))),
        preferred_element_type=f32)                                 # (G, S, DH)
    proj = jax.lax.dot_general(
        ctx.astype(bf16), woh_ref[...], (((2,), (1,)), ((0,), (0,))),
        preferred_element_type=f32)                                 # (G, S, H)
    # Combine heads by summation (== concat(heads) @ W_o, no lane concat).
    projh = proj.reshape(nb, NUM_HEADS, S, H)
    attn = projh[:, 0]
    for h in range(1, NUM_HEADS):
        attn = attn + projh[:, h]                                   # (nb, S, H)

    # ---- token-major 2-D slab for AddNorm + FFN + AddNorm ----
    x2 = x.reshape(nb * S, H)
    attn2 = attn.reshape(nb * S, H)

    slab = pslab_ref[...]                                           # (8, FFN_H) f32
    g1, beta1 = slab[0:1, :H], slab[1:2, :H]
    b1 = slab[2:3, :]                                               # (1, FFN_H)
    b2 = slab[3:4, :H]
    g2, beta2 = slab[4:5, :H], slab[5:6, :H]

    # AddNorm 1 (dropout == identity at inference)
    y = _layernorm(attn2 + x2, g1, beta1)                           # (nb*S, H) f32

    # Position-wise FFN
    h1 = jnp.maximum(
        jnp.dot(y.astype(bf16), w1_ref[...], preferred_element_type=f32) + b1,
        0.0)                                                        # (nb*S, FFN_H)
    f = jnp.dot(h1.astype(bf16), w2_ref[...], preferred_element_type=f32) + b2

    # AddNorm 2
    out = _layernorm(f + y, g2, beta2)                              # (nb*S, H)
    o_ref[...] = out.reshape(nb, S, H).astype(o_ref.dtype)


# -------------------- one-time host-side parameter packing --------------------
def pack_params(params):
    """Pack/cast weights once at init so the per-call wrapper issues no XLA ops."""
    bf16 = jnp.bfloat16
    # NOTE: assumes wo's input-feature ordering is head-major then d_head
    # (matches d2l MultiHeadAttention's transpose_output concat layout).
    wqkv = jnp.concatenate(
        [params["wq"].T, params["wk"].T, params["wv"].T], axis=0)   # (3H, H)
    wqkv_rep = jnp.tile(wqkv[None], (B, 1, 1)).astype(bf16)         # (B, 3H, H)
    woh = params["wo"].reshape(NUM_HEADS, D_HEAD, H)
    woh_rep = jnp.tile(woh, (B, 1, 1)).astype(bf16)                 # (B*NH, DH, H)

    slab = jnp.zeros((8, FFN_H), jnp.float32)
    slab = slab.at[0, :H].set(params["g1"].reshape(-1))
    slab = slab.at[1, :H].set(params["beta1"].reshape(-1))
    slab = slab.at[2, :FFN_H].set(params["b1"].reshape(-1))
    slab = slab.at[3, :H].set(params["b2"].reshape(-1))
    slab = slab.at[4, :H].set(params["g2"].reshape(-1))
    slab = slab.at[5, :H].set(params["beta2"].reshape(-1))

    return {
        "wqkv": wqkv_rep,
        "woh": woh_rep,
        "w1": params["w1"].astype(bf16),
        "w2": params["w2"].astype(bf16),
        "slab": slab,
    }


def _default_batch_grid():
    """Shard the batch across TensorCores only on multi-TC chips (v7x)."""
    try:
        kind = jax.devices()[0].device_kind.lower()
    except Exception:
        return 1
    return B if "v7" in kind else 1


def transformer_encoder_block(x, valid_lens, packed, *, batch_grid=None):
    """x: (B, S, H) float32, valid_lens: (B,) int32, packed: output of pack_params."""
    if batch_grid is None:
        batch_grid = _default_batch_grid()
    assert B % batch_grid == 0
    nb = B // batch_grid

    grid_spec = pltpu.PrefetchScalarGridSpec(
        num_scalar_prefetch=1,
        grid=(batch_grid,),
        in_specs=[
            pl.BlockSpec((nb, S, H), lambda i, vl: (i, 0, 0)),              # x
            pl.BlockSpec((nb, 3 * H, H), lambda i, vl: (i, 0, 0)),          # wqkv
            pl.BlockSpec((nb * NUM_HEADS, D_HEAD, H), lambda i, vl: (i, 0, 0)),  # woh
            pl.BlockSpec((H, FFN_H), lambda i, vl: (0, 0)),                 # w1
            pl.BlockSpec((FFN_H, H), lambda i, vl: (0, 0)),                 # w2
            pl.BlockSpec((8, FFN_H), lambda i, vl: (0, 0)),                 # param slab
        ],
        out_specs=pl.BlockSpec((nb, S, H), lambda i, vl: (i, 0, 0)),
    )
    fn = pl.pallas_call(
        encoder_block_kernel,
        out_shape=jax.ShapeDtypeStruct((B, S, H), jnp.float32),
        grid_spec=grid_spec,
        compiler_params=pltpu.CompilerParams(dimension_semantics=("parallel",)),
    )
    return fn(valid_lens, x, packed["wqkv"], packed["woh"],
              packed["w1"], packed["w2"], packed["slab"])


# ------------------------------- pure-JAX reference ---------------------------
def reference_forward(x, valid_lens, p):
    """Reference forward; matmul operands bf16 with f32 accumulation to mirror
    the kernel's MXU precision policy; everything else f32."""
    bf16, f32 = jnp.bfloat16, jnp.float32

    def mm(a, b):
        return jnp.matmul(a.astype(bf16), b.astype(bf16), preferred_element_type=f32)

    q = mm(x, p["wq"]); k = mm(x, p["wk"]); v = mm(x, p["wv"])        # (B,S,H)
    qh = q.reshape(B, S, NUM_HEADS, D_HEAD).transpose(0, 2, 1, 3)
    kh = k.reshape(B, S, NUM_HEADS, D_HEAD).transpose(0, 2, 1, 3)
    vh = v.reshape(B, S, NUM_HEADS, D_HEAD).transpose(0, 2, 1, 3)
    scores = jnp.einsum("bhqd,bhkd->bhqk", qh.astype(bf16), kh.astype(bf16),
                        preferred_element_type=f32) / math.sqrt(D_HEAD)
    key_ids = jnp.arange(S)[None, None, None, :]
    mask = key_ids < valid_lens[:, None, None, None]
    scores = jnp.where(mask, scores, -1e6)
    attn = jax.nn.softmax(scores, axis=-1)
    o = jnp.einsum("bhqk,bhkd->bhqd", attn.astype(bf16), vh.astype(bf16),
                   preferred_element_type=f32)
    o = o.transpose(0, 2, 1, 3).reshape(B, S, H)
    o = mm(o, p["wo"])

    def ln(t, g, bb):
        mu = t.mean(-1, keepdims=True)
        var = ((t - mu) ** 2).mean(-1, keepdims=True)
        return (t - mu) / jnp.sqrt(var + EPS) * g + bb

    y = ln(o + x, p["g1"], p["beta1"])
    h1 = jnp.maximum(mm(y, p["w1"]) + p["b1"], 0.0)
    f = mm(h1, p["w2"]) + p["b2"]
    return ln(f + y, p["g2"], p["beta2"])


def make_params(key):
    ks = jax.random.split(key, 8)
    scale = 0.1
    return {
        # attention projection weights, stored (in, out); use_bias=False
        "wq": scale * jax.random.normal(ks[0], (H, H), jnp.float32),
        "wk": scale * jax.random.normal(ks[1], (H, H), jnp.float32),
        "wv": scale * jax.random.normal(ks[2], (H, H), jnp.float32),
        "wo": scale * jax.random.normal(ks[3], (H, H), jnp.float32),
        # LayerNorm 1
        "g1": jnp.ones((1, H), jnp.float32),
        "beta1": jnp.zeros((1, H), jnp.float32),
        # FFN dense1 (H -> FFN_H) and dense2 (FFN_H -> H), (in, out), with bias
        "w1": scale * jax.random.normal(ks[4], (H, FFN_H), jnp.float32),
        "b1": scale * jax.random.normal(ks[5], (1, FFN_H), jnp.float32),
        "w2": scale * jax.random.normal(ks[6], (FFN_H, H), jnp.float32),
        "b2": scale * jax.random.normal(ks[7], (1, H), jnp.float32),
        # LayerNorm 2
        "g2": jnp.ones((1, H), jnp.float32),
        "beta2": jnp.zeros((1, H), jnp.float32),
    }


if __name__ == "__main__":
    key = jax.random.PRNGKey(0)
    kx, kp = jax.random.split(key)
    x = jax.random.normal(kx, (B, S, H), jnp.float32)
    valid_lens = jnp.array([S, 5], dtype=jnp.int32)
    params = make_params(kp)
    packed = pack_params(params)          # one-time init-style packing

    out = transformer_encoder_block(x, valid_lens, packed)
    out = jax.block_until_ready(out)

    ref = reference_forward(x, valid_lens, params)
    # Tolerance covers bf16-operand rounding and the approx softmax reciprocal;
    # real bugs are O(0.1+).
    np.testing.assert_allclose(np.asarray(out), np.asarray(ref), rtol=2e-2, atol=2e-2)

    print("KERNEL_OK")
</pallas_src>

<mosaic_0001>
module attributes {stable_mosaic.version = 11 : i64} {
  func.func @encoder_block_kernel(%arg0: i32, %arg1: memref<2xi32, #tpu.memory_space<smem>>, %arg2: memref<2x8x32xf32, #tpu.memory_space<vmem>>, %arg3: memref<2x96x32xbf16, #tpu.memory_space<vmem>>, %arg4: memref<8x8x32xbf16, #tpu.memory_space<vmem>>, %arg5: memref<32x64xbf16, #tpu.memory_space<vmem>>, %arg6: memref<64x32xbf16, #tpu.memory_space<vmem>>, %arg7: memref<8x64xf32, #tpu.memory_space<vmem>>, %arg8: memref<2x8x32xf32, #tpu.memory_space<vmem>>) attributes {dimension_semantics = [#tpu.dimension_semantics<parallel>], iteration_bounds = array<i64: 1>, scalar_prefetch = 1 : i64, scratch_operands = 0 : i64, tpu.core_type = #tpu.core_type<tc>, window_params = [{transform_indices = @transform_0, window_bounds = array<i64: 2, 8, 32>}, {transform_indices = @transform_1, window_bounds = array<i64: 2, 96, 32>}, {transform_indices = @transform_2, window_bounds = array<i64: 8, 8, 32>}, {pipeline_mode = #tpu.pipeline_mode<synchronous>, transform_indices = @transform_3, window_bounds = array<i64: 32, 64>}, {pipeline_mode = #tpu.pipeline_mode<synchronous>, transform_indices = @transform_4, window_bounds = array<i64: 64, 32>}, {pipeline_mode = #tpu.pipeline_mode<synchronous>, transform_indices = @transform_5, window_bounds = array<i64: 8, 64>}, {transform_indices = @transform_6, window_bounds = array<i64: 2, 8, 32>}]} {
    %c2_i32 = arith.constant 2 : i32
    %0 = arith.muli %arg0, %c2_i32 : i32
    %c0 = arith.constant 0 : index
    %c0_0 = arith.constant 0 : index
    %c0_1 = arith.constant 0 : index
    %1 = vector.load %arg2[%c0, %c0_0, %c0_1] : memref<2x8x32xf32, #tpu.memory_space<vmem>>, vector<2x8x32xf32>
    %2 = arith.truncf %1 : vector<2x8x32xf32> to vector<2x8x32xbf16>
    %c0_2 = arith.constant 0 : index
    %c0_3 = arith.constant 0 : index
    %c0_4 = arith.constant 0 : index
    %3 = vector.load %arg3[%c0_2, %c0_3, %c0_4] : memref<2x96x32xbf16, #tpu.memory_space<vmem>>, vector<2x96x32xbf16>
    %cst = arith.constant dense<0.000000e+00> : vector<2x96x8xf32>
    %4 = tpu.matmul %3, %2, %cst {dimension_numbers = #tpu.dot_dimension_numbers<[2], [2], [1], [1], [0, 0, 0, 1, 1, 1], [0], [0]>} : vector<2x96x32xbf16>, vector<2x8x32xbf16>, vector<2x96x8xf32> -> vector<2x96x8xf32>
    %5 = vector.extract_strided_slice %4 {offsets = [0, 0, 0], sizes = [2, 32, 8], strides = [1, 1, 1]} : vector<2x96x8xf32> to vector<2x32x8xf32>
    %6 = vector.shape_cast %5 : vector<2x32x8xf32> to vector<8x8x8xf32>
    %7 = arith.truncf %6 : vector<8x8x8xf32> to vector<8x8x8xbf16>
    %8 = vector.extract_strided_slice %4 {offsets = [0, 32, 0], sizes = [2, 32, 8], strides = [1, 1, 1]} : vector<2x96x8xf32> to vector<2x32x8xf32>
    %9 = vector.shape_cast %8 : vector<2x32x8xf32> to vector<8x8x8xf32>
    %10 = arith.truncf %9 : vector<8x8x8xf32> to vector<8x8x8xbf16>
    %11 = vector.extract_strided_slice %4 {offsets = [0, 64, 0], sizes = [2, 32, 8], strides = [1, 1, 1]} : vector<2x96x8xf32> to vector<2x32x8xf32>
    %12 = vector.shape_cast %11 : vector<2x32x8xf32> to vector<8x8x8xf32>
    %13 = arith.truncf %12 : vector<8x8x8xf32> to vector<8x8x8xbf16>
    %cst_5 = arith.constant dense<0.000000e+00> : vector<8x8x8xf32>
    %14 = tpu.matmul %7, %10, %cst_5 {dimension_numbers = #tpu.dot_dimension_numbers<[1], [1], [2], [2], [0, 0, 0, 2, 1, 2], [0], [0]>} : vector<8x8x8xbf16>, vector<8x8x8xbf16>, vector<8x8x8xf32> -> vector<8x8x8xf32>
    %cst_6 = arith.constant 0.353553385 : f32
    %15 = vector.broadcast %cst_6 : f32 to vector<8x8x8xf32>
    %16 = arith.mulf %14, %15 : vector<8x8x8xf32>
    %17 = tpu.iota {dimensions = array<i32: 1>} : vector<8x8xi32>
    %c0_i32 = arith.constant 0 : i32
    %18 = arith.addi %0, %c0_i32 : i32
    %19 = arith.index_cast %18 : i32 to index
    %20 = memref.load %arg1[%19] : memref<2xi32, #tpu.memory_space<smem>>
    %21 = vector.broadcast %20 : i32 to vector<8x8xi32>
    %22 = arith.cmpi slt, %17, %21 : vector<8x8xi32>
    %c1_i32 = arith.constant 1 : i32
    %23 = arith.addi %0, %c1_i32 : i32
    %24 = arith.index_cast %23 : i32 to index
    %25 = memref.load %arg1[%24] : memref<2xi32, #tpu.memory_space<smem>>
    %26 = vector.broadcast %25 : i32 to vector<8x8xi32>
    %27 = arith.cmpi slt, %17, %26 : vector<8x8xi32>
    %28 = vector.shape_cast %22 : vector<8x8xi1> to vector<1x8x8xi1>
    %29 = vector.shape_cast %22 : vector<8x8xi1> to vector<1x8x8xi1>
    %30 = vector.shape_cast %22 : vector<8x8xi1> to vector<1x8x8xi1>
    %31 = vector.shape_cast %22 : vector<8x8xi1> to vector<1x8x8xi1>
    %32 = vector.shape_cast %27 : vector<8x8xi1> to vector<1x8x8xi1>
    %33 = vector.shape_cast %27 : vector<8x8xi1> to vector<1x8x8xi1>
    %34 = vector.shape_cast %27 : vector<8x8xi1> to vector<1x8x8xi1>
    %35 = vector.shape_cast %27 : vector<8x8xi1> to vector<1x8x8xi1>
    %36 = tpu.concatenate %28, %29, %30, %31, %32, %33, %34, %35 in 0 : vector<1x8x8xi1>, vector<1x8x8xi1>, vector<1x8x8xi1>, vector<1x8x8xi1>, vector<1x8x8xi1>, vector<1x8x8xi1>, vector<1x8x8xi1>, vector<1x8x8xi1> -> vector<8x8x8xi1>
    %cst_7 = arith.constant -1.000000e+06 : f32
    %37 = vector.broadcast %cst_7 : f32 to vector<8x8x8xf32>
    %38 = arith.select %36, %16, %37 : vector<8x8x8xi1>, vector<8x8x8xf32>
    %cst_8 = arith.constant dense<0xFF800000> : vector<8x8xf32>
    %39 = vector.multi_reduction <maximumf>, %38, %cst_8 [2] : vector<8x8x8xf32> to vector<8x8xf32>
    %40 = vector.shape_cast %39 : vector<8x8xf32> to vector<8x8x1xf32>
    %41 = vector.broadcast %40 : vector<8x8x1xf32> to vector<8x8x8xf32>
    %42 = arith.subf %38, %41 : vector<8x8x8xf32>
    %43 = math.exp %42 : vector<8x8x8xf32>
    %cst_9 = arith.constant dense<0.000000e+00> : vector<8x8xf32>
    %44 = vector.multi_reduction <add>, %43, %cst_9 [2] : vector<8x8x8xf32> to vector<8x8xf32>
    %45 = vector.shape_cast %44 : vector<8x8xf32> to vector<8x8x1xf32>
    %46 = tpu.reciprocal %45 {approx = true} : vector<8x8x1xf32> -> vector<8x8x1xf32>
    %47 = vector.broadcast %46 : vector<8x8x1xf32> to vector<8x8x8xf32>
    %48 = arith.mulf %43, %47 : vector<8x8x8xf32>
    %49 = arith.truncf %48 : vector<8x8x8xf32> to vector<8x8x8xbf16>
    %cst_10 = arith.constant dense<0.000000e+00> : vector<8x8x8xf32>
    %50 = tpu.matmul %49, %13, %cst_10 {dimension_numbers = #tpu.dot_dimension_numbers<[2], [2], [1], [1], [0, 0, 0, 1, 1, 1], [0], [0]>} : vector<8x8x8xbf16>, vector<8x8x8xbf16>, vector<8x8x8xf32> -> vector<8x8x8xf32>
    %51 = arith.truncf %50 : vector<8x8x8xf32> to vector<8x8x8xbf16>
    %c0_11 = arith.constant 0 : index
    %c0_12 = arith.constant 0 : index
    %c0_13 = arith.constant 0 : index
    %52 = vector.load %arg4[%c0_11, %c0_12, %c0_13] : memref<8x8x32xbf16, #tpu.memory_space<vmem>>, vector<8x8x32xbf16>
    %cst_14 = arith.constant dense<0.000000e+00> : vector<8x8x32xf32>
    %53 = tpu.matmul %51, %52, %cst_14 {dimension_numbers = #tpu.dot_dimension_numbers<[2], [1], [1], [2], [0, 0, 0, 1, 1, 2], [0], [0]>} : vector<8x8x8xbf16>, vector<8x8x32xbf16>, vector<8x8x32xf32> -> vector<8x8x32xf32>
    %54 = vector.shape_cast %53 : vector<8x8x32xf32> to vector<2x4x8x32xf32>
    %55 = vector.extract_strided_slice %54 {offsets = [0, 0, 0, 0], sizes = [2, 1, 8, 32], strides = [1, 1, 1, 1]} : vector<2x4x8x32xf32> to vector<2x1x8x32xf32>
    %56 = vector.shape_cast %55 : vector<2x1x8x32xf32> to vector<2x8x32xf32>
    %57 = vector.extract_strided_slice %54 {offsets = [0, 1, 0, 0], sizes = [2, 1, 8, 32], strides = [1, 1, 1, 1]} : vector<2x4x8x32xf32> to vector<2x1x8x32xf32>
    %58 = vector.shape_cast %57 : vector<2x1x8x32xf32> to vector<2x8x32xf32>
    %59 = arith.addf %56, %58 : vector<2x8x32xf32>
    %60 = vector.extract_strided_slice %54 {offsets = [0, 2, 0, 0], sizes = [2, 1, 8, 32], strides = [1, 1, 1, 1]} : vector<2x4x8x32xf32> to vector<2x1x8x32xf32>
    %61 = vector.shape_cast %60 : vector<2x1x8x32xf32> to vector<2x8x32xf32>
    %62 = arith.addf %59, %61 : vector<2x8x32xf32>
    %63 = vector.extract_strided_slice %54 {offsets = [0, 3, 0, 0], sizes = [2, 1, 8, 32], strides = [1, 1, 1, 1]} : vector<2x4x8x32xf32> to vector<2x1x8x32xf32>
    %64 = vector.shape_cast %63 : vector<2x1x8x32xf32> to vector<2x8x32xf32>
    %65 = arith.addf %62, %64 : vector<2x8x32xf32>
    %66 = vector.shape_cast %1 : vector<2x8x32xf32> to vector<16x32xf32>
    %67 = vector.shape_cast %65 : vector<2x8x32xf32> to vector<16x32xf32>
    %c0_15 = arith.constant 0 : index
    %c0_16 = arith.constant 0 : index
    %68 = vector.load %arg7[%c0_15, %c0_16] : memref<8x64xf32, #tpu.memory_space<vmem>>, vector<8x64xf32>
    %69 = vector.extract_strided_slice %68 {offsets = [0, 0], sizes = [1, 32], strides = [1, 1]} : vector<8x64xf32> to vector<1x32xf32>
    %70 = vector.extract_strided_slice %68 {offsets = [1, 0], sizes = [1, 32], strides = [1, 1]} : vector<8x64xf32> to vector<1x32xf32>
    %71 = vector.extract_strided_slice %68 {offsets = [2, 0], sizes = [1, 64], strides = [1, 1]} : vector<8x64xf32> to vector<1x64xf32>
    %72 = vector.extract_strided_slice %68 {offsets = [3, 0], sizes = [1, 32], strides = [1, 1]} : vector<8x64xf32> to vector<1x32xf32>
    %73 = vector.extract_strided_slice %68 {offsets = [4, 0], sizes = [1, 32], strides = [1, 1]} : vector<8x64xf32> to vector<1x32xf32>
    %74 = vector.extract_strided_slice %68 {offsets = [5, 0], sizes = [1, 32], strides = [1, 1]} : vector<8x64xf32> to vector<1x32xf32>
    %75 = arith.addf %67, %66 : vector<16x32xf32>
    %cst_17 = arith.constant dense<0.000000e+00> : vector<16xf32>
    %76 = vector.multi_reduction <add>, %75, %cst_17 [1] : vector<16x32xf32> to vector<16xf32>
    %77 = vector.shape_cast %76 : vector<16xf32> to vector<16x1xf32>
    %cst_18 = arith.constant 3.200000e+01 : f32
    %78 = vector.broadcast %cst_18 : f32 to vector<16x1xf32>
    %79 = arith.divf %77, %78 : vector<16x1xf32>
    %80 = vector.broadcast %79 : vector<16x1xf32> to vector<16x32xf32>
    %81 = arith.subf %75, %80 : vector<16x32xf32>
    %82 = arith.mulf %81, %81 : vector<16x32xf32>
    %cst_19 = arith.constant dense<0.000000e+00> : vector<16xf32>
    %83 = vector.multi_reduction <add>, %82, %cst_19 [1] : vector<16x32xf32> to vector<16xf32>
    %84 = vector.shape_cast %83 : vector<16xf32> to vector<16x1xf32>
    %cst_20 = arith.constant 3.200000e+01 : f32
    %85 = vector.broadcast %cst_20 : f32 to vector<16x1xf32>
    %86 = arith.divf %84, %85 : vector<16x1xf32>
    %87 = vector.broadcast %79 : vector<16x1xf32> to vector<16x32xf32>
    %88 = arith.subf %75, %87 : vector<16x32xf32>
    %cst_21 = arith.constant 9.99999974E-6 : f32
    %89 = vector.broadcast %cst_21 : f32 to vector<16x1xf32>
    %90 = arith.addf %86, %89 : vector<16x1xf32>
    %91 = math.rsqrt %90 : vector<16x1xf32>
    %92 = vector.broadcast %91 : vector<16x1xf32> to vector<16x32xf32>
    %93 = arith.mulf %88, %92 : vector<16x32xf32>
    %94 = vector.broadcast %69 : vector<1x32xf32> to vector<16x32xf32>
    %95 = arith.mulf %93, %94 : vector<16x32xf32>
    %96 = vector.broadcast %70 : vector<1x32xf32> to vector<16x32xf32>
    %97 = arith.addf %95, %96 : vector<16x32xf32>
    %98 = arith.truncf %97 : vector<16x32xf32> to vector<16x32xbf16>
    %c0_22 = arith.constant 0 : index
    %c0_23 = arith.constant 0 : index
    %99 = vector.load %arg5[%c0_22, %c0_23] : memref<32x64xbf16, #tpu.memory_space<vmem>>, vector<32x64xbf16>
    %cst_24 = arith.constant dense<0.000000e+00> : vector<16x64xf32>
    %100 = tpu.matmul %98, %99, %cst_24 {dimension_numbers = #tpu.dot_dimension_numbers<[1], [0], [0], [1], [0, 0, 1, 1], [], []>} : vector<16x32xbf16>, vector<32x64xbf16>, vector<16x64xf32> -> vector<16x64xf32>
    %101 = vector.broadcast %71 : vector<1x64xf32> to vector<16x64xf32>
    %102 = arith.addf %100, %101 : vector<16x64xf32>
    %cst_25 = arith.constant 0.000000e+00 : f32
    %103 = vector.broadcast %cst_25 : f32 to vector<16x64xf32>
    %104 = arith.maximumf %102, %103 : vector<16x64xf32>
    %105 = arith.truncf %104 : vector<16x64xf32> to vector<16x64xbf16>
    %c0_26 = arith.constant 0 : index
    %c0_27 = arith.constant 0 : index
    %106 = vector.load %arg6[%c0_26, %c0_27] : memref<64x32xbf16, #tpu.memory_space<vmem>>, vector<64x32xbf16>
    %cst_28 = arith.constant dense<0.000000e+00> : vector<16x32xf32>
    %107 = tpu.matmul %105, %106, %cst_28 {dimension_numbers = #tpu.dot_dimension_numbers<[1], [0], [0], [1], [0, 0, 1, 1], [], []>} : vector<16x64xbf16>, vector<64x32xbf16>, vector<16x32xf32> -> vector<16x32xf32>
    %108 = vector.broadcast %72 : vector<1x32xf32> to vector<16x32xf32>
    %109 = arith.addf %107, %108 : vector<16x32xf32>
    %110 = arith.addf %109, %97 : vector<16x32xf32>
    %cst_29 = arith.constant dense<0.000000e+00> : vector<16xf32>
    %111 = vector.multi_reduction <add>, %110, %cst_29 [1] : vector<16x32xf32> to vector<16xf32>
    %112 = vector.shape_cast %111 : vector<16xf32> to vector<16x1xf32>
    %cst_30 = arith.constant 3.200000e+01 : f32
    %113 = vector.broadcast %cst_30 : f32 to vector<16x1xf32>
    %114 = arith.divf %112, %113 : vector<16x1xf32>
    %115 = vector.broadcast %114 : vector<16x1xf32> to vector<16x32xf32>
    %116 = arith.subf %110, %115 : vector<16x32xf32>
    %117 = arith.mulf %116, %116 : vector<16x32xf32>
    %cst_31 = arith.constant dense<0.000000e+00> : vector<16xf32>
    %118 = vector.multi_reduction <add>, %117, %cst_31 [1] : vector<16x32xf32> to vector<16xf32>
    %119 = vector.shape_cast %118 : vector<16xf32> to vector<16x1xf32>
    %cst_32 = arith.constant 3.200000e+01 : f32
    %120 = vector.broadcast %cst_32 : f32 to vector<16x1xf32>
    %121 = arith.divf %119, %120 : vector<16x1xf32>
    %122 = vector.broadcast %114 : vector<16x1xf32> to vector<16x32xf32>
    %123 = arith.subf %110, %122 : vector<16x32xf32>
    %cst_33 = arith.constant 9.99999974E-6 : f32
    %124 = vector.broadcast %cst_33 : f32 to vector<16x1xf32>
    %125 = arith.addf %121, %124 : vector<16x1xf32>
    %126 = math.rsqrt %125 : vector<16x1xf32>
    %127 = vector.broadcast %126 : vector<16x1xf32> to vector<16x32xf32>
    %128 = arith.mulf %123, %127 : vector<16x32xf32>
    %129 = vector.broadcast %73 : vector<1x32xf32> to vector<16x32xf32>
    %130 = arith.mulf %128, %129 : vector<16x32xf32>
    %131 = vector.broadcast %74 : vector<1x32xf32> to vector<16x32xf32>
    %132 = arith.addf %130, %131 : vector<16x32xf32>
    %133 = vector.shape_cast %132 : vector<16x32xf32> to vector<2x8x32xf32>
    %c0_34 = arith.constant 0 : index
    %c0_35 = arith.constant 0 : index
    %c0_36 = arith.constant 0 : index
    %134 = vector.load %arg8[%c0_34, %c0_35, %c0_36] : memref<2x8x32xf32, #tpu.memory_space<vmem>>, vector<2x8x32xf32>
    tpu.vector_store %arg8[%c0_34, %c0_35, %c0_36], %133 {strides = array<i32>} : memref<2x8x32xf32, #tpu.memory_space<vmem>>, vector<2x8x32xf32>,
    return
  }
  func.func @transform_0(%arg0: i32, %arg1: memref<2xi32, #tpu.memory_space<smem>>) -> (i32, i32, i32) {
    %c0_i32 = arith.constant 0 : i32
    %c0_i32_0 = arith.constant 0 : i32
    %c0_i32_1 = arith.constant 0 : i32
    return %arg0, %c0_i32, %c0_i32_0 : i32, i32, i32
  }
  func.func @transform_1(%arg0: i32, %arg1: memref<2xi32, #tpu.memory_space<smem>>) -> (i32, i32, i32) {
    %c0_i32 = arith.constant 0 : i32
    %c0_i32_0 = arith.constant 0 : i32
    %c0_i32_1 = arith.constant 0 : i32
    return %arg0, %c0_i32, %c0_i32_0 : i32, i32, i32
  }
  func.func @transform_2(%arg0: i32, %arg1: memref<2xi32, #tpu.memory_space<smem>>) -> (i32, i32, i32) {
    %c0_i32 = arith.constant 0 : i32
    %c0_i32_0 = arith.constant 0 : i32
    %c0_i32_1 = arith.constant 0 : i32
    return %arg0, %c0_i32, %c0_i32_0 : i32, i32, i32
  }
  func.func @transform_3(%arg0: i32, %arg1: memref<2xi32, #tpu.memory_space<smem>>) -> (i32, i32) {
    %c0_i32 = arith.constant 0 : i32
    %c0_i32_0 = arith.constant 0 : i32
    %c0_i32_1 = arith.constant 0 : i32
    return %c0_i32, %c0_i32_0 : i32, i32
  }
  func.func @transform_4(%arg0: i32, %arg1: memref<2xi32, #tpu.memory_space<smem>>) -> (i32, i32) {
    %c0_i32 = arith.constant 0 : i32
    %c0_i32_0 = arith.constant 0 : i32
    %c0_i32_1 = arith.constant 0 : i32
    return %c0_i32, %c0_i32_0 : i32, i32
  }
  func.func @transform_5(%arg0: i32, %arg1: memref<2xi32, #tpu.memory_space<smem>>) -> (i32, i32) {
    %c0_i32 = arith.constant 0 : i32
    %c0_i32_0 = arith.constant 0 : i32
    %c0_i32_1 = arith.constant 0 : i32
    return %c0_i32, %c0_i32_0 : i32, i32
  }
  func.func @transform_6(%arg0: i32, %arg1: memref<2xi32, #tpu.memory_space<smem>>) -> (i32, i32, i32) {
    %c0_i32 = arith.constant 0 : i32
    %c0_i32_0 = arith.constant 0 : i32
    %c0_i32_1 = arith.constant 0 : i32
    return %arg0, %c0_i32, %c0_i32_0 : i32, i32, i32
  }
}

</mosaic_0001>

<bundles_post_ra>
// kernel: tpu_custom_call.1
= control target key start
LH: loop header
LB: loop body
LE: loop exit
PB: predicated region body
PF: predicated region fallthrough
CT: control target
= control target key end

     0   :  { %s2812_s0 = inlined_call_operand.vmem [shape: s32[2], index: 0, kind: input, shape index: {}]   ;;  %s2813_s1 = inlined_call_operand.vmem [shape: f32[2,8,32], index: 1, kind: input, shape index: {}]   ;;  %s2814_s2 = inlined_call_operand.vmem [shape: bf16[2,96,32], index: 2, kind: input, shape index: {}]   ;;  %s2815_s3 = inlined_call_operand.vmem [shape: bf16[8,8,32], index: 3, kind: input, shape index: {}]   ;;  %s2816_s4 = inlined_call_operand.vmem [shape: bf16[32,64], index: 4, kind: input, shape index: {}]   ;;  %s2817_s5 = inlined_call_operand.vmem [shape: bf16[64,32], index: 5, kind: input, shape index: {}]   ;;  %s2818_s6 = inlined_call_operand.vmem [shape: f32[8,64], index: 6, kind: input, shape index: {}]   ;;  %s2819_s7 = inlined_call_operand.hbm [shape: f32[2,8,32], index: 7, kind: output, shape index: {}]  }
   0x1   :  { %s12_s26 = sshll.u32 %s2812_s0, 4  ;;  %s13_s26 = int_to_ptr.vmem [resolvable:$true] %s12_s26 }
   0x2   :  { %s2363_s27 = scalar_lea.vmem %s13_s26, 16  ;;  %p2368_p1 = scmp.lt.s32.totalorder %s13_s26, %s13_s26 }
   0x3   :  { %p2364_p0 = scmp.ne.s32.totalorder %s13_s26, %s2363_s27  ;;  %p2369_p2 = scmp.lt.s32.totalorder %s2363_s27, %s2363_s27 }
   0x5   :  { %p2370_p3 = por %p2369_p2, %p2368_p1 }
   0x7   :  { %p2371_p4 = pnand %p2370_p3, %p2364_p0 }
   0x9   :  { %2374 = shalt.err (!%p2371_p4)  }
   0xa   :  { %s2401_s28 = smov [#allocation3]  }
   0xb   :  { %15 = dma.vmem_to_smem %s13_s26, 16, %s2401_s28, [#allocation2] }
   0xc   :  { %2397 = dma.done.wait [#allocation2], 16 }
   0xd   :  { %2398 = vsyncadd [#allocation2], 4294967280 }
   0xe   :  { %17 = sfence }
   0xf   :  { %v2453_v0 = vld [vmem:[%s2813_s1] sm:$0xff]  ;;  %vm91_vm0 = vcmask 261120   ;;  %v34_v3 = vld [vmem:[%s2813_s1 + $0x8] sm:$0xff]  ;;  %v2306_v6 = vld [vmem:[%s2814_s2 + $0x30] sm:$0xff]  }
  0x10   :  { %v35_v1 = vpack.c.bf16 %v2453_v0, %v2453_v0  ;;  %v2304_v2 = vld [vmem:[%s2814_s2] sm:$0xff]   ;;  %v36_v5 = vpack.c.bf16 %v34_v3, %v34_v3  ;;  %2119 = vmatprep.mubr.msk.bf16.mxu1 %vm91_vm0, %v2306_v6  ;;  %v2305_v8 = vld [vmem:[%s2814_s2 + $0x8] sm:$0xff]   ;;  %v2307_v9 = vld [vmem:[%s2814_s2 + $0x38] sm:$0xff]  }
  0x11   :  { %2105 = vmatprep.mubr.msk.bf16.mxu0 %vm91_vm0, %v2304_v2  ;;  %v2308_v10 = vld [vmem:[%s2814_s2 + $0x10] sm:$0xff]   ;;  %v2310_v11 = vld [vmem:[%s2814_s2 + $0x40] sm:$0xff]   ;;  %v2309_v12 = vld [vmem:[%s2814_s2 + $0x18] sm:$0xff]  }
  0x12   :  { %2295 = vmatprep.subr.msk.bf16.mxu0 %vm91_vm0, %v35_v1  ;;  %v111_v4 = vsel %vm91_vm0, %v35_v1, 0  ;;  %2296 = vmatprep.subr.msk.bf16.mxu1 %vm91_vm0, %v36_v5  ;;  %v243_v7 = vsel %vm91_vm0, %v36_v5, 0 }
  0x13   :  { %2104 = vmatpush3.bf16.xpose.msra.mxu0 %v111_v4  ;;  %2118 = vmatpush3.bf16.xpose.msra.mxu1 %v243_v7 }
  0x1a   :  { %2106 = vmatmul.mubr.msk.bf16.vlgmr.msra.gmra.mrb[0].mxu0 %vm91_vm0, %v2305_v8  ;;  %2120 = vmatmul.mubr.msk.bf16.vlgmr.msra.gmra.mrb[0].mxu1 %vm91_vm0, %v2307_v9 }
  0x1b   :  { %2109 = vmatprep.mubr.msk.bf16.mxu0 %vm91_vm0, %v2308_v10  ;;  %2123 = vmatprep.mubr.msk.bf16.mxu1 %vm91_vm0, %v2310_v11 }
  0x1c   :  { %18 = vsyncpa [#allocation5], 0  ;;  %v2311_v13 = vld [vmem:[%s2814_s2 + $0x48] sm:$0xff]   ;;  %v2312_v14 = vld [vmem:[%s2814_s2 + $0x20] sm:$0xff]   ;;  %v2402_v17 = vmov 0.0   ;;  %vm2403_vm1 = vmmov 0  }
  0x1d   :  { %v2313_v15 = vld [vmem:[%s2814_s2 + $0x28] sm:$0xff]   ;;  %v2314_v16 = vld [vmem:[%s2814_s2 + $0x50] sm:$0xff]   ;;  %2131 = vmatprep.subr.bf16.mxu0 %v2402_v17  ;;  %2137 = vmatprep.subr.bf16.mxu1 %v2402_v17  ;;  %v2315_v18 = vld [vmem:[%s2814_s2 + $0x58] sm:$0xff]   ;;  %vm370_vm2 = vcmask 1043456   ;;  %vm366_vm3 = vcmask 64512   ;;  %s858_s2 = sld [smem:[#allocation3]] }
  0x1e   :  { %s2008_s9 = sld [smem:[#allocation3 + $0x1]]  ;;  %vm1873_vm6 = vcmask 523264  }
  0x22   :  { %2110 = vmatmul.mubr.msk.bf16.gmra.mrb[4].mxu0 %vm91_vm0, %v2309_v12  ;;  %2124 = vmatmul.mubr.msk.bf16.gmra.mrb[4].mxu1 %vm91_vm0, %v2311_v13 }
  0x23   :  { %2113 = vmatprep.mubr.msk.bf16.mxu0 %vm91_vm0, %v2312_v14  ;;  %2127 = vmatprep.mubr.msk.bf16.mxu1 %vm91_vm0, %v2314_v16  ;;  %v856_v16 = vlaneseq }
  0x2a   :  { %2114 = vmatmul.mubr.msk.bf16.gmra.mrb[8].mxu0 %vm91_vm0, %v2313_v15  ;;  %2128 = vmatmul.mubr.msk.bf16.gmra.mrb[8].mxu1 %vm91_vm0, %v2315_v18  ;;  %v857_v18 = vand.u32 127, %v856_v16 }
  0x2b   :  { %2133 = vmatprep.mubr.msk.bf16.mxu0 %vm2403_vm1, %v2402_v17  ;;  %2139 = vmatprep.mubr.msk.bf16.mxu1 %vm2403_vm1, %v2402_v17 }
  0xed   :  { %v2107_v19 = vpop.f32.mrb[0].mxu0  ;;  %v2121_v24 = vpop.f32.mrb[0].mxu1 }
  0xee   :  { %v147_v20 = vpop.f32.mrb[1].mxu0  ;;  %v328_v21 = vpack.c.bf16 %v2107_v19, %v2107_v19  ;;  %v279_v26 = vpop.f32.mrb[1].mxu1  ;;  %v332_v41 = vpack.c.bf16 %v2121_v24, %v2121_v24  ;;  %v859_v19 = vstv %s858_s2 }
  0xef   :  { %v2108_v22 = vpop.f32.mrb[2].mxu0  ;;  %v326_v23 = vpack.c.bf16 %v147_v20, %v147_v20  ;;  %v2122_v27 = vpop.f32.mrb[2].mxu1  ;;  %v330_v32 = vpack.c.bf16 %v279_v26, %v279_v26  ;;  %vm2575_vm4 = vcmp.lt.s32.totalorder %v857_v18, %v859_v19 }
  0xf0   :  { %476 = vxpose.xlu1.c.b16.start.end [1/1] (short) (narrow) %v328_v21, 16  ;;  %v150_v25 = vpop.f32.mrb[3].mxu0  ;;  %v329_v28 = vpack.c.bf16 %v2108_v22, %v2108_v22  ;;  %v282_v29 = vpop.f32.mrb[3].mxu1  ;;  %v333_v38 = vpack.c.bf16 %v2122_v27, %v2122_v27 }
  0xf1   :  { %350 = vxpose.xlu0.c.b16.start.end [1/1] (short) (narrow) %v326_v23, 16  ;;  %v327_v30 = vpack.c.bf16 %v150_v25, %v150_v25  ;;  %v331_v31 = vpack.c.bf16 %v282_v29, %v282_v29 }
  0xf4   :  { %538 = vxpose.xlu1.c.b16.start.end [1/1] (short) (narrow) %v329_v28, 16 }
  0xf5   :  { %414 = vxpose.xlu0.c.b16.start.end [1/1] (short) (narrow) %v327_v30, 16  ;;  %v2111_v33 = vpop.f32.mrb[4].mxu0  ;;  %v2125_v37 = vpop.f32.mrb[4].mxu1 }
  0xf6   :  { %v163_v34 = vpop.f32.mrb[5].mxu0  ;;  %v295_v40 = vpop.f32.mrb[5].mxu1  ;;  %v336_v49 = vpack.c.bf16 %v2111_v33, %v2111_v33  ;;  %v340_v4 = vpack.c.bf16 %v2125_v37, %v2125_v37 }
  0xf7   :  { %v334_v35 = vpack.c.bf16 %v163_v34, %v163_v34  ;;  %v2112_v36 = vpop.f32.mrb[6].mxu0  ;;  %v2126_v44 = vpop.f32.mrb[6].mxu1  ;;  %v338_v59 = vpack.c.bf16 %v295_v40, %v295_v40 }
  0xf8   :  { %662 = vxpose.xlu1.c.b16.start.end [1/1] (short) (narrow) %v331_v31, 16  ;;  %v166_v39 = vpop.f32.mrb[7].mxu0  ;;  %v298_v45 = vpop.f32.mrb[7].mxu1  ;;  %v496_v57 = vsel %vm370_vm2, %v336_v49, 0  ;;  %v337_v58 = vpack.c.bf16 %v2112_v36, %v2112_v36  ;;  %v744_v6 = vsel %vm370_vm2, %v340_v4, 0  ;;  %v341_v7 = vpack.c.bf16 %v2126_v44, %v2126_v44 }
  0xf9   :  { %600 = vxpose.xlu0.c.b16.start.end [1/1] (short) (narrow) %v330_v32, 16  ;;  %v372_v42 = vsel %vm370_vm2, %v334_v35, 0  ;;  %v335_v43 = vpack.c.bf16 %v166_v39, %v166_v39  ;;  %v620_v63 = vsel %vm370_vm2, %v338_v59, 0  ;;  %v339_v1 = vpack.c.bf16 %v298_v45, %v298_v45 }
  0xfa   :  { %2132 = vmatpush3.bf16.msra.mxu0 %v372_v42  ;;  %v558_v62 = vsel %vm370_vm2, %v337_v58, 0  ;;  %v806_v10 = vsel %vm370_vm2, %v341_v7, 0  ;;  %v863_v45 = vstv %s2008_s9 }
  0xfb   :  { %v434_v46 = vsel %vm370_vm2, %v335_v43, 0  ;;  %2143 = vmatprep.subr.bf16.mxu0 %v2402_v17  ;;  %v682_v3 = vsel %vm370_vm2, %v339_v1, 0  ;;  %vm2594_vm5 = vcmp.lt.s32.totalorder %v857_v18, %v863_v45 }
  0xfc   :  { %786 = vxpose.xlu1.c.b16.start.end [1/1] (short) (narrow) %v333_v38, 16  ;;  %2138 = vmatpush3.bf16.msra.mxu1 %v434_v46 }
  0xfd   :  { %724 = vxpose.xlu0.c.b16.start.end [1/1] (short) (narrow) %v332_v41, 16  ;;  %2149 = vmatprep.subr.bf16.mxu1 %v2402_v17  ;;  %v2522_v47 = vpop.f32.mrb[8].mxu0  ;;  %v2524_v48 = vpop.f32.mrb[8].mxu1 }
  0xfe   :  { %v179_v50 = vpop.f32.mrb[9].mxu0  ;;  %v2526_v51 = vpop.f32.mrb[9].mxu1 }
  0xff   :  { %v2528_v52 = vpop.f32.mrb[10].mxu0  ;;  %v2530_v53 = vpop.f32.mrb[10].mxu1  ;;  %v342_v9 = vpack.c.bf16 %v179_v50, %v179_v50 }
 0x100   :  { %v182_v54 = vpop.f32.mrb[11].mxu0  ;;  %v2532_v56 = vpop.f32.mrb[11].mxu1 }
 0x101   :  { %v973_v12 = vsel %vm366_vm3, %v342_v9, 0  ;;  %v343_v13 = vpack.c.bf16 %v182_v54, %v182_v54 }
 0x103   :  { %v1019_v15 = vsel %vm366_vm3, %v343_v13, 0 }
 0x156   :  { %v484_v61 = vpop.trf.xlu1 }
 0x157   :  { %v358_v55 = vpop.trf.xlu0 }
 0x158   :  { %2134 = vmatmul.mubr.msk.bf16.vlgmr.msra.gmra.mrb[12].mxu0 %vm366_vm3, %v358_v55 }
 0x159   :  { %2144 = vmatpush3.bf16.msra.mxu0 %v496_v57  ;;  %2145 = vmatprep.mubr.msk.bf16.mxu0 %vm2403_vm1, %v2402_v17 }
 0x15a   :  { %2155 = vmatprep.subr.bf16.mxu0 %v2402_v17  ;;  %v546_v2 = vpop.trf.xlu1 }
 0x15b   :  { %v422_v60 = vpop.trf.xlu0 }
 0x15c   :  { %2140 = vmatmul.mubr.msk.bf16.vlgmr.msra.gmra.mrb[12].mxu1 %vm366_vm3, %v422_v60 }
 0x15d   :  { %2150 = vmatpush3.bf16.msra.mxu1 %v558_v62  ;;  %2151 = vmatprep.mubr.msk.bf16.mxu1 %vm2403_vm1, %v2402_v17 }
 0x15e   :  { %2161 = vmatprep.subr.bf16.mxu1 %v2402_v17  ;;  %v670_v8 = vpop.trf.xlu1 }
 0x15f   :  { %v608_v5 = vpop.trf.xlu0 }
 0x160   :  { %2146 = vmatmul.mubr.msk.bf16.vlgmr.msra.gmra.mrb[16].mxu0 %vm366_vm3, %v484_v61 }
 0x161   :  { %2156 = vmatpush3.bf16.msra.mxu0 %v620_v63  ;;  %2157 = vmatprep.mubr.msk.bf16.mxu0 %vm2403_vm1, %v2402_v17 }
 0x162   :  { %2167 = vmatprep.subr.bf16.mxu0 %v2402_v17  ;;  %v794_v14 = vpop.trf.xlu1 }
 0x163   :  { %v732_v11 = vpop.trf.xlu0 }
 0x164   :  { %2152 = vmatmul.mubr.msk.bf16.vlgmr.msra.gmra.mrb[16].mxu1 %vm366_vm3, %v546_v2 }
 0x165   :  { %2162 = vmatpush3.bf16.msra.mxu1 %v682_v3  ;;  %2163 = vmatprep.mubr.msk.bf16.mxu1 %vm2403_vm1, %v2402_v17 }
 0x166   :  { %2173 = vmatprep.subr.bf16.mxu1 %v2402_v17 }
 0x168   :  { %2158 = vmatmul.mubr.msk.bf16.vlgmr.msra.gmra.mrb[20].mxu0 %vm366_vm3, %v608_v5 }
 0x169   :  { %2168 = vmatpush3.bf16.msra.mxu0 %v744_v6  ;;  %2169 = vmatprep.mubr.msk.bf16.mxu0 %vm2403_vm1, %v2402_v17 }
 0x16a   :  { %2179 = vmatprep.subr.bf16.mxu0 %v2402_v17 }
 0x16c   :  { %2164 = vmatmul.mubr.msk.bf16.vlgmr.msra.gmra.mrb[20].mxu1 %vm366_vm3, %v670_v8 }
 0x16d   :  { %2174 = vmatpush3.bf16.msra.mxu1 %v806_v10  ;;  %2175 = vmatprep.mubr.msk.bf16.mxu1 %vm2403_vm1, %v2402_v17 }
 0x16e   :  { %2185 = vmatprep.subr.bf16.mxu1 %v2402_v17 }
 0x170   :  { %2170 = vmatmul.mubr.msk.bf16.vlgmr.msra.gmra.mrb[24].mxu0 %vm366_vm3, %v732_v11 }
 0x171   :  { %2181 = vmatprep.mubr.msk.bf16.mxu0 %vm2403_vm1, %v2402_v17 }
 0x172   :  { %2180 = vmatpush3.bf16.xpose.msra.mxu0 %v973_v12 }
 0x173   :  { %2191 = vmatprep.subr.bf16.mxu0 %v2402_v17 }
 0x174   :  { %2176 = vmatmul.mubr.msk.bf16.vlgmr.msra.gmra.mrb[24].mxu1 %vm366_vm3, %v794_v14 }
 0x175   :  { %2187 = vmatprep.mubr.msk.bf16.mxu1 %vm2403_vm1, %v2402_v17 }
 0x176   :  { %2186 = vmatpush3.bf16.xpose.msra.mxu1 %v1019_v15 }
 0x177   :  { %2197 = vmatprep.subr.bf16.mxu1 %v2402_v17 }
 0x22b   :  { %v408_v20 = vpop.f32.mrb[12].mxu0 }
 0x22c   :  { %v848_v22 = vmul.f32 0.35355338, %v408_v20  ;;  %v2135_v23 = vpop.f32.mrb[13].mxu0 }
 0x22d   :  { %v411_v24 = vpop.f32.mrb[14].mxu0 }
 0x22e   :  { %v2136_v25 = vpop.f32.mrb[15].mxu0  ;;  %v2581_v26 = vsel %vm2575_vm4, %v848_v22, -1000000.0 }
 0x22f   :  { %v470_v27 = vpop.f32.mrb[12].mxu1  ;;  %v873_v28 = vsel %vm366_vm3, %v2581_v26, -inf }
 0x230   :  { %v849_v29 = vmul.f32 0.35355338, %v470_v27  ;;  %v2141_v30 = vpop.f32.mrb[13].mxu1  ;;  %874 = vmax.xlane.f32.xlu0 %v873_v28 }
 0x231   :  { %v473_v31 = vpop.f32.mrb[14].mxu1 }
 0x232   :  { %v2142_v32 = vpop.f32.mrb[15].mxu1  ;;  %v866_v33 = vsel %vm2575_vm4, %v849_v29, -1000000.0 }
 0x233   :  { %v532_v34 = vpop.f32.mrb[16].mxu0  ;;  %v876_v35 = vsel %vm366_vm3, %v866_v33, -inf }
 0x234   :  { %v850_v36 = vmul.f32 0.35355338, %v532_v34  ;;  %877 = vmax.xlane.f32.xlu1 %v876_v35  ;;  %v2147_v37 = vpop.f32.mrb[17].mxu0 }
 0x235   :  { %v535_v38 = vpop.f32.mrb[18].mxu0 }
 0x236   :  { %v2148_v39 = vpop.f32.mrb[19].mxu0  ;;  %v867_v40 = vsel %vm2575_vm4, %v850_v36, -1000000.0 }
 0x237   :  { %v594_v41 = vpop.f32.mrb[16].mxu1  ;;  %v879_v42 = vsel %vm366_vm3, %v867_v40, -inf }
 0x238   :  { %v851_v43 = vmul.f32 0.35355338, %v594_v41  ;;  %v2153_v44 = vpop.f32.mrb[17].mxu1  ;;  %880 = vmax.xlane.f32.xlu0 %v879_v42 }
 0x239   :  { %v597_v46 = vpop.f32.mrb[18].mxu1 }
 0x23a   :  { %v2154_v49 = vpop.f32.mrb[19].mxu1  ;;  %v868_v50 = vsel %vm2575_vm4, %v851_v43, -1000000.0 }
 0x23b   :  { %v656_v54 = vpop.f32.mrb[20].mxu0  ;;  %v882_v55 = vsel %vm366_vm3, %v868_v50, -inf }
 0x23c   :  { %v852_v58 = vmul.f32 0.35355338, %v656_v54  ;;  %883 = vmax.xlane.f32.xlu1 %v882_v55  ;;  %v2159_v59 = vpop.f32.mrb[21].mxu0 }
 0x23d   :  { %v659_v60 = vpop.f32.mrb[22].mxu0 }
 0x23e   :  { %v2160_v61 = vpop.f32.mrb[23].mxu0  ;;  %v869_v62 = vsel %vm2594_vm5, %v852_v58, -1000000.0 }
 0x23f   :  { %v718_v63 = vpop.f32.mrb[20].mxu1  ;;  %v885_v1 = vsel %vm366_vm3, %v869_v62, -inf }
 0x240   :  { %v853_v2 = vmul.f32 0.35355338, %v718_v63  ;;  %v2165_v3 = vpop.f32.mrb[21].mxu1  ;;  %886 = vmax.xlane.f32.xlu0 %v885_v1 }
 0x241   :  { %v721_v4 = vpop.f32.mrb[22].mxu1 }
 0x242   :  { %v2166_v5 = vpop.f32.mrb[23].mxu1  ;;  %v870_v6 = vsel %vm2594_vm5, %v853_v2, -1000000.0 }
 0x243   :  { %v780_v7 = vpop.f32.mrb[24].mxu0  ;;  %v888_v8 = vsel %vm366_vm3, %v870_v6, -inf }
 0x244   :  { %v854_v9 = vmul.f32 0.35355338, %v780_v7  ;;  %889 = vmax.xlane.f32.xlu1 %v888_v8  ;;  %v2171_v10 = vpop.f32.mrb[25].mxu0 }
 0x245   :  { %v783_v11 = vpop.f32.mrb[26].mxu0 }
 0x246   :  { %v2172_v12 = vpop.f32.mrb[27].mxu0  ;;  %v871_v13 = vsel %vm2594_vm5, %v854_v9, -1000000.0  ;;  %v344_v11 = vpack.c.bf16 %v2522_v47, %v2522_v47 }
 0x247   :  { %v842_v14 = vpop.f32.mrb[24].mxu1  ;;  %v891_v15 = vsel %vm366_vm3, %v871_v13, -inf }
 0x248   :  { %v855_v18 = vmul.f32 0.35355338, %v842_v14  ;;  %v2177_v19 = vpop.f32.mrb[25].mxu1  ;;  %892 = vmax.xlane.f32.xlu0 %v891_v15 }
 0x249   :  { %v845_v20 = vpop.f32.mrb[26].mxu1  ;;  %v345_v19 = vpack.c.bf16 %v2528_v52, %v2528_v52 }
 0x24a   :  { %v2178_v21 = vpop.f32.mrb[27].mxu1  ;;  %v872_v22 = vsel %vm2594_vm5, %v855_v18, -1000000.0  ;;  %v1065_v18 = vsel %vm366_vm3, %v344_v11, 0 }
 0x24b   :  { %v894_v23 = vsel %vm366_vm3, %v872_v22, -inf }
 0x24c   :  { %895 = vmax.xlane.f32.xlu1 %v894_v23  ;;  %v1111_v23 = vsel %vm366_vm3, %v345_v19, 0 }
 0x2bd   :  { %v875_v24 = vpop.xlane.xlu0 %874 }
 0x2be   :  { %v897_v25 = vsub.f32 %v2581_v26, %v875_v24  ;;  %v346_v24 = vpack.c.bf16 %v2526_v51, %v2526_v51 }
 0x2c0   :  { %v905_v27 = vmul.f32 1.442695, %v897_v25 }
 0x2c1   :  { %v878_v28 = vpop.xlane.xlu1 %877 }
 0x2c2   :  { %2322 = vpow2.f32 %v905_v27  ;;  %v898_v29 = vsub.f32 %v866_v33, %v878_v28 }
 0x2c4   :  { %v907_v30 = vmul.f32 1.442695, %v898_v29  ;;  %v1157_v29 = vsel %vm366_vm3, %v346_v24, 0 }
 0x2c5   :  { %v881_v31 = vpop.xlane.xlu0 %880 }
 0x2c6   :  { %2324 = vpow2.f32 %v907_v30  ;;  %v899_v32 = vsub.f32 %v867_v40, %v881_v31  ;;  %v347_v30 = vpack.c.bf16 %v2532_v56, %v2532_v56 }
 0x2c8   :  { %v909_v34 = vmul.f32 1.442695, %v899_v32 }
 0x2c9   :  { %v884_v35 = vpop.xlane.xlu1 %883 }
 0x2ca   :  { %2326 = vpow2.f32 %v909_v34  ;;  %v900_v36 = vsub.f32 %v868_v50, %v884_v35  ;;  %v348_v35 = vpack.c.bf16 %v2524_v48, %v2524_v48  ;;  %v349_v48 = vpack.c.bf16 %v2530_v53, %v2530_v53 }
 0x2cc   :  { %v2323_v37 = vpop.eup %2322  ;;  %v911_v38 = vmul.f32 1.442695, %v900_v36  ;;  %v1203_v36 = vsel %vm366_vm3, %v347_v30, 0 }
 0x2cd   :  { %v887_v39 = vpop.xlane.xlu0 %886  ;;  %v921_v41 = vsel %vm366_vm3, %v2323_v37, 0.0 }
 0x2ce   :  { %2328 = vpow2.f32 %v911_v38  ;;  %v901_v42 = vsub.f32 %v869_v62, %v887_v39  ;;  %922 = vadd.xlane.f32.xlu0 %v921_v41  ;;  %v1249_v41 = vsel %vm366_vm3, %v348_v35, 0 }
 0x2d0   :  { %v2325_v26 = vpop.eup %2324  ;;  %v913_v43 = vmul.f32 1.442695, %v901_v42 }
 0x2d1   :  { %v890_v44 = vpop.xlane.xlu1 %889  ;;  %v924_v33 = vsel %vm366_vm3, %v2325_v26, 0.0 }
 0x2d2   :  { %2330 = vpow2.f32 %v913_v43  ;;  %v902_v45 = vsub.f32 %v870_v6, %v890_v44  ;;  %925 = vadd.xlane.f32.xlu1 %v924_v33  ;;  %v1345_v44 = vld [vmem:[%s2815_s3] sm:$0xf]  ;;  %v1295_v33 = vsel %vm366_vm3, %v349_v48, 0 }
 0x2d4   :  { %v2327_v40 = vpop.eup %2326  ;;  %v915_v46 = vmul.f32 1.442695, %v902_v45 }
 0x2d5   :  { %v893_v49 = vpop.xlane.xlu0 %892  ;;  %v927_v50 = vsel %vm366_vm3, %v2327_v40, 0.0 }
 0x2d6   :  { %2332 = vpow2.f32 %v915_v46  ;;  %v903_v54 = vsub.f32 %v871_v13, %v893_v49  ;;  %928 = vadd.xlane.f32.xlu0 %v927_v50  ;;  %v1346_v49 = vld [vmem:[%s2815_s3 + $0x4] sm:$0xf] }
 0x2d8   :  { %v2329_v55 = vpop.eup %2328  ;;  %v917_v57 = vmul.f32 1.442695, %v903_v54 }
 0x2d9   :  { %v896_v58 = vpop.xlane.xlu1 %895  ;;  %v930_v59 = vsel %vm366_vm3, %v2329_v55, 0.0 }
 0x2da   :  { %2334 = vpow2.f32 %v917_v57  ;;  %v904_v60 = vsub.f32 %v872_v22, %v896_v58  ;;  %931 = vadd.xlane.f32.xlu1 %v930_v59  ;;  %v1347_v57 = vld [vmem:[%s2815_s3 + $0x8] sm:$0xf] }
 0x2dc   :  { %v2331_v61 = vpop.eup %2330  ;;  %v919_v62 = vmul.f32 1.442695, %v904_v60 }
 0x2dd   :  { %v933_v63 = vsel %vm366_vm3, %v2331_v61, 0.0 }
 0x2de   :  { %2336 = vpow2.f32 %v919_v62  ;;  %934 = vadd.xlane.f32.xlu0 %v933_v63  ;;  %v1348_v63 = vld [vmem:[%s2815_s3 + $0xc] sm:$0xf] }
 0x2e0   :  { %v2616_v1 = vpop.eup %2332 }
 0x2e1   :  { %v936_v2 = vsel %vm366_vm3, %v2616_v1, 0.0 }
 0x2e2   :  { %937 = vadd.xlane.f32.xlu1 %v936_v2 }
 0x2e4   :  { %v2620_v3 = vpop.eup %2334 }
 0x2e5   :  { %v939_v4 = vsel %vm366_vm3, %v2620_v3, 0.0 }
 0x2e6   :  { %940 = vadd.xlane.f32.xlu0 %v939_v4 }
 0x2e8   :  { %v2624_v5 = vpop.eup %2336 }
 0x2e9   :  { %v942_v6 = vsel %vm366_vm3, %v2624_v5, 0.0 }
 0x2ea   :  { %943 = vadd.xlane.f32.xlu1 %v942_v6 }
 0x35b   :  { %v923_v7 = vpop.xlane.xlu0 %922 }
 0x35c   :  { %2338 = vrcp.f32 %v923_v7  ;;  %v1349_v7 = vld [vmem:[%s2815_s3 + $0x10] sm:$0xf] }
 0x35f   :  { %v926_v8 = vpop.xlane.xlu1 %925 }
 0x360   :  { %2340 = vrcp.f32 %v926_v8 }
 0x363   :  { %v929_v9 = vpop.xlane.xlu0 %928 }
 0x364   :  { %2342 = vrcp.f32 %v929_v9 }
 0x366   :  { %v2339_v10 = vpop.eup %2338 }
 0x367   :  { %v953_v12 = vmul.f32 %v2339_v10, %v2323_v37  ;;  %v932_v13 = vpop.xlane.xlu1 %931 }
 0x368   :  { %2344 = vrcp.f32 %v932_v13 }
 0x369   :  { %v961_v14 = vpack.c.bf16 %v953_v12, %v953_v12  ;;  %v1541_v12 = vsel %vm370_vm2, %v1349_v7, 0 }
 0x36a   :  { %v2341_v15 = vpop.eup %2340 }
 0x36b   :  { %v954_v20 = vmul.f32 %v2341_v15, %v2325_v26  ;;  %2182 = vmatmul.mubr.msk.bf16.vlgmr.msra.gmra.mrb[28].mxu0 %vm366_vm3, %v961_v14  ;;  %v935_v21 = vpop.xlane.xlu0 %934  ;;  %v1350_v14 = vld [vmem:[%s2815_s3 + $0x14] sm:$0xf] }
 0x36c   :  { %2192 = vmatpush3.bf16.xpose.msra.mxu0 %v1065_v18  ;;  %2346 = vrcp.f32 %v935_v21  ;;  %2193 = vmatprep.mubr.msk.bf16.mxu0 %vm2403_vm1, %v2402_v17  ;;  %v1587_v21 = vsel %vm370_vm2, %v1350_v14, 0 }
 0x36d   :  { %v962_v47 = vpack.c.bf16 %v954_v20, %v954_v20  ;;  %2203 = vmatprep.subr.bf16.mxu0 %v2402_v17 }
 0x36e   :  { %v2343_v22 = vpop.eup %2342 }
 0x36f   :  { %v955_v25 = vmul.f32 %v2343_v22, %v2327_v40  ;;  %v938_v52 = vpop.xlane.xlu1 %937  ;;  %2188 = vmatmul.mubr.msk.bf16.vlgmr.msra.gmra.mrb[28].mxu1 %vm366_vm3, %v962_v47  ;;  %v1357_v40 = vsel %vm370_vm2, %v1345_v44, 0  ;;  %v1351_v22 = vld [vmem:[%s2815_s3 + $0x18] sm:$0xf] }
 0x370   :  { %2348 = vrcp.f32 %v938_v52  ;;  %2198 = vmatpush3.bf16.xpose.msra.mxu1 %v1111_v23  ;;  %2199 = vmatprep.mubr.msk.bf16.mxu1 %vm2403_vm1, %v2402_v17 }
 0x371   :  { %v963_v27 = vpack.c.bf16 %v955_v25, %v955_v25  ;;  %2209 = vmatprep.subr.bf16.mxu1 %v2402_v17 }
 0x372   :  { %v2345_v28 = vpop.eup %2344 }
 0x373   :  { %v956_v31 = vmul.f32 %v2345_v28, %v2329_v55  ;;  %2194 = vmatmul.mubr.msk.bf16.vlgmr.msra.gmra.mrb[32].mxu0 %vm366_vm3, %v963_v27  ;;  %v941_v51 = vpop.xlane.xlu0 %940  ;;  %v1403_v55 = vsel %vm370_vm2, %v1346_v49, 0  ;;  %v1633_v27 = vsel %vm370_vm2, %v1351_v22, 0 }
 0x374   :  { %2204 = vmatpush3.bf16.xpose.msra.mxu0 %v1157_v29  ;;  %2350 = vrcp.f32 %v941_v51  ;;  %2205 = vmatprep.mubr.msk.bf16.mxu0 %vm2403_vm1, %v2402_v17  ;;  %v1352_v29 = vld [vmem:[%s2815_s3 + $0x1c] sm:$0xf] }
 0x375   :  { %v964_v32 = vpack.c.bf16 %v956_v31, %v956_v31  ;;  %2215 = vmatprep.subr.bf16.mxu0 %v2402_v17 }
 0x376   :  { %v2347_v34 = vpop.eup %2346 }
 0x377   :  { %v957_v37 = vmul.f32 %v2347_v34, %v2331_v61  ;;  %v944_v56 = vpop.xlane.xlu1 %943  ;;  %2200 = vmatmul.mubr.msk.bf16.vlgmr.msra.gmra.mrb[32].mxu1 %vm366_vm3, %v964_v32  ;;  %v1449_v61 = vsel %vm370_vm2, %v1347_v57, 0  ;;  %v1679_v34 = vsel %vm370_vm2, %v1352_v29, 0 }
 0x378   :  { %2352 = vrcp.f32 %v944_v56  ;;  %2210 = vmatpush3.bf16.xpose.msra.mxu1 %v1203_v36  ;;  %2211 = vmatprep.mubr.msk.bf16.mxu1 %vm2403_vm1, %v2402_v17 }
 0x379   :  { %v965_v38 = vpack.c.bf16 %v957_v37, %v957_v37  ;;  %2221 = vmatprep.subr.bf16.mxu1 %v2402_v17 }
 0x37a   :  { %v2349_v39 = vpop.eup %2348 }
 0x37b   :  { %v958_v42 = vmul.f32 %v2349_v39, %v2616_v1  ;;  %2206 = vmatmul.mubr.msk.bf16.vlgmr.msra.gmra.mrb[36].mxu0 %vm366_vm3, %v965_v38 }
 0x37c   :  { %2216 = vmatpush3.bf16.xpose.msra.mxu0 %v1249_v41  ;;  %2217 = vmatprep.mubr.msk.bf16.mxu0 %vm2403_vm1, %v2402_v17 }
 0x37d   :  { %v966_v26 = vpack.c.bf16 %v958_v42, %v958_v42  ;;  %2227 = vmatprep.subr.bf16.mxu0 %v2402_v17 }
 0x37e   :  { %v2351_v43 = vpop.eup %2350 }
 0x37f   :  { %v959_v53 = vmul.f32 %v2351_v43, %v2620_v3  ;;  %2212 = vmatmul.mubr.msk.bf16.vlgmr.msra.gmra.mrb[36].mxu1 %vm366_vm3, %v966_v26 }
 0x380   :  { %2222 = vmatpush3.bf16.xpose.msra.mxu1 %v1295_v33  ;;  %2223 = vmatprep.mubr.msk.bf16.mxu1 %vm2403_vm1, %v2402_v17 }
 0x381   :  { %v967_v45 = vpack.c.bf16 %v959_v53, %v959_v53  ;;  %2233 = vmatprep.subr.bf16.mxu1 %v2402_v17 }
 0x382   :  { %v2353_v46 = vpop.eup %2352 }
 0x383   :  { %v960_v50 = vmul.f32 %v2353_v46, %v2624_v5  ;;  %2218 = vmatmul.mubr.msk.bf16.vlgmr.msra.gmra.mrb[40].mxu0 %vm366_vm3, %v967_v45  ;;  %v1495_v5 = vsel %vm370_vm2, %v1348_v63, 0 }
 0x384   :  { %2228 = vmatpush3.bf16.msra.mxu0 %v1357_v40  ;;  %2229 = vmatprep.mubr.msk.bf16.mxu0 %vm2403_vm1, %v2402_v17 }
 0x385   :  { %v968_v54 = vpack.c.bf16 %v960_v50, %v960_v50  ;;  %2239 = vmatprep.subr.bf16.mxu0 %v2402_v17 }
 0x387   :  { %2224 = vmatmul.mubr.msk.bf16.vlgmr.msra.gmra.mrb[40].mxu1 %vm366_vm3, %v968_v54 }
 0x388   :  { %2234 = vmatpush3.bf16.msra.mxu1 %v1403_v55  ;;  %2235 = vmatprep.mubr.msk.bf16.mxu1 %vm2403_vm1, %v2402_v17 }
 0x389   :  { %2245 = vmatprep.subr.bf16.mxu1 %v2402_v17 }
 0x43e   :  { %v1009_v58 = vpop.f32.mrb[28].mxu0 }
 0x43f   :  { %v1337_v59 = vpack.c.bf16 %v1009_v58, %v1009_v58  ;;  %v2183_v60 = vpop.f32.mrb[29].mxu0 }
 0x440   :  { %v1012_v62 = vpop.f32.mrb[30].mxu0 }
 0x441   :  { %v2184_v1 = vpop.f32.mrb[31].mxu0  ;;  %2230 = vmatmul.mubr.msk.bf16.vlgmr.msra.gmra.mrb[44].mxu0 %vm366_vm3, %v1337_v59 }
 0x442   :  { %v1055_v2 = vpop.f32.mrb[28].mxu1  ;;  %2240 = vmatpush3.bf16.msra.mxu0 %v1449_v61  ;;  %2241 = vmatprep.mubr.msk.bf16.mxu0 %vm2403_vm1, %v2402_v17 }
 0x443   :  { %v1338_v3 = vpack.c.bf16 %v1055_v2, %v1055_v2  ;;  %v2189_v4 = vpop.f32.mrb[29].mxu1  ;;  %2251 = vmatprep.subr.bf16.mxu0 %v2402_v17 }
 0x444   :  { %v1058_v6 = vpop.f32.mrb[30].mxu1 }
 0x445   :  { %v2190_v8 = vpop.f32.mrb[31].mxu1  ;;  %2236 = vmatmul.mubr.msk.bf16.vlgmr.msra.gmra.mrb[44].mxu1 %vm366_vm3, %v1338_v3 }
 0x446   :  { %2246 = vmatpush3.bf16.msra.mxu1 %v1495_v5  ;;  %v1101_v9 = vpop.f32.mrb[32].mxu0  ;;  %2247 = vmatprep.mubr.msk.bf16.mxu1 %vm2403_vm1, %v2402_v17 }
 0x447   :  { %v1339_v10 = vpack.c.bf16 %v1101_v9, %v1101_v9  ;;  %v2195_v11 = vpop.f32.mrb[33].mxu0  ;;  %2257 = vmatprep.subr.bf16.mxu1 %v2402_v17 }
 0x448   :  { %v1104_v13 = vpop.f32.mrb[34].mxu0 }
 0x449   :  { %v2196_v15 = vpop.f32.mrb[35].mxu0  ;;  %2242 = vmatmul.mubr.msk.bf16.vlgmr.msra.gmra.mrb[48].mxu0 %vm366_vm3, %v1339_v10 }
 0x44a   :  { %v1147_v18 = vpop.f32.mrb[32].mxu1  ;;  %2252 = vmatpush3.bf16.msra.mxu0 %v1541_v12  ;;  %2253 = vmatprep.mubr.msk.bf16.mxu0 %vm2403_vm1, %v2402_v17 }
 0x44b   :  { %v1340_v19 = vpack.c.bf16 %v1147_v18, %v1147_v18  ;;  %v2201_v20 = vpop.f32.mrb[33].mxu1  ;;  %2263 = vmatprep.subr.bf16.mxu0 %v2402_v17 }
 0x44c   :  { %v1150_v47 = vpop.f32.mrb[34].mxu1 }
 0x44d   :  { %v2202_v23 = vpop.f32.mrb[35].mxu1  ;;  %2248 = vmatmul.mubr.msk.bf16.vlgmr.msra.gmra.mrb[48].mxu1 %vm366_vm3, %v1340_v19 }
 0x44e   :  { %2258 = vmatpush3.bf16.msra.mxu1 %v1587_v21  ;;  %v1193_v24 = vpop.f32.mrb[36].mxu0  ;;  %2259 = vmatprep.mubr.msk.bf16.mxu1 %vm2403_vm1, %v2402_v17 }
 0x44f   :  { %v1341_v25 = vpack.c.bf16 %v1193_v24, %v1193_v24  ;;  %v2207_v52 = vpop.f32.mrb[37].mxu0  ;;  %2269 = vmatprep.subr.bf16.mxu1 %v2402_v17 }
 0x450   :  { %v1196_v28 = vpop.f32.mrb[38].mxu0 }
 0x451   :  { %v2208_v30 = vpop.f32.mrb[39].mxu0  ;;  %2254 = vmatmul.mubr.msk.bf16.vlgmr.msra.gmra.mrb[52].mxu0 %vm366_vm3, %v1341_v25  ;;  %v2362_v25 = vld [vmem:[%s2813_s1 + $0x8] sm:$0xff] }
 0x452   :  { %v1239_v31 = vpop.f32.mrb[36].mxu1  ;;  %2264 = vmatpush3.bf16.msra.mxu0 %v1633_v27  ;;  %2265 = vmatprep.mubr.msk.bf16.mxu0 %vm2403_vm1, %v2402_v17 }
 0x453   :  { %v1342_v51 = vpack.c.bf16 %v1239_v31, %v1239_v31  ;;  %v2213_v32 = vpop.f32.mrb[37].mxu1  ;;  %2275 = vmatprep.subr.bf16.mxu0 %v2402_v17 }
 0x454   :  { %v1242_v35 = vpop.f32.mrb[38].mxu1 }
 0x455   :  { %v2214_v36 = vpop.f32.mrb[39].mxu1  ;;  %2260 = vmatmul.mubr.msk.bf16.vlgmr.msra.gmra.mrb[52].mxu1 %vm366_vm3, %v1342_v51 }
 0x456   :  { %2270 = vmatpush3.bf16.msra.mxu1 %v1679_v34  ;;  %v1285_v37 = vpop.f32.mrb[40].mxu0  ;;  %2271 = vmatprep.mubr.msk.bf16.mxu1 %vm2403_vm1, %v2402_v17 }
 0x457   :  { %v1343_v56 = vpack.c.bf16 %v1285_v37, %v1285_v37  ;;  %v2219_v38 = vpop.f32.mrb[41].mxu0  ;;  %2283 = vmatprep.subr.bf16.mxu1 %v2402_v17 }
 0x458   :  { %v1288_v39 = vpop.f32.mrb[42].mxu0  ;;  %v2317_v38 = vld [vmem:[%s2816_s4 + $0x8] sm:$0xff]  }
 0x459   :  { %v2220_v41 = vpop.f32.mrb[43].mxu0  ;;  %2266 = vmatmul.mubr.msk.bf16.vlgmr.msra.gmra.mrb[56].mxu0 %vm366_vm3, %v1343_v56  ;;  %v2316_v56 = vld [vmem:[%s2816_s4] sm:$0xff]  }
 0x45a   :  { %v1331_v48 = vpop.f32.mrb[40].mxu1  ;;  %2279 = vmatprep.mubr.msk.bf16.mxu0 %vm2403_vm1, %v2402_v17  ;;  %2276 = vmatpush3.bf16.msra.mxu0 %v2316_v56  ;;  %v2318_v39 = vld [vmem:[%s2817_s5] sm:$0xff]   ;;  %v2319_v41 = vld [vmem:[%s2817_s5 + $0x8] sm:$0xff]  }
 0x45b   :  { %v1344_v42 = vpack.c.bf16 %v1331_v48, %v1331_v48  ;;  %v2225_v26 = vpop.f32.mrb[41].mxu1  ;;  %2277 = vmatprep.subr.bf16.mxu0 %v2402_v17 }
 0x45c   :  { %v1334_v43 = vpop.f32.mrb[42].mxu1 }
 0x45d   :  { %v2226_v44 = vpop.f32.mrb[43].mxu1  ;;  %2272 = vmatmul.mubr.msk.bf16.vlgmr.msra.gmra.mrb[56].mxu1 %vm366_vm3, %v1344_v42 }
 0x45e   :  { %2291 = vmatprep.mubr.msk.bf16.mxu1 %vm2403_vm1, %v2402_v17  ;;  %2278 = vmatpush3.bf16.msra.mxu0 %v2317_v38 }
 0x45f   :  { %2284 = vmatpush3.bf16.msra.mxu1 %v2318_v39 }
 0x460   :  { %2285 = vmatprep.subr.bf16.mxu1 %v2402_v17 }
 0x463   :  { %2286 = vmatpush3.bf16.msra.mxu1 %v2319_v41 }
 0x464   :  { %2287 = vmatprep.subr.bf16.mxu1 %v2402_v17 }
 0x514   :  { %v1393_v33 = vpop.f32.mrb[44].mxu0 }
 0x515   :  { %v2231_v53 = vpop.f32.mrb[45].mxu0 }
 0x516   :  { %v1396_v45 = vpop.f32.mrb[46].mxu0  ;;  %v2767_v53 = vshrl.u32 %v856_v16, 7 }
 0x517   :  { %v2232_v40 = vpop.f32.mrb[47].mxu0 }
 0x518   :  { %v1439_v46 = vpop.f32.mrb[44].mxu1  ;;  %v1759_v45 = vsub.s32 0, %v2767_v53  ;;  %v1948_v39 = vsub.s32 4, %v2767_v53  ;;  %v1954_v41 = vsub.s32 5, %v2767_v53 }
 0x519   :  { %v1721_v49 = vadd.f32 %v1439_v46, %v1393_v33  ;;  %v2237_v50 = vpop.f32.mrb[45].mxu1  ;;  %v2773_v46 = vld [vmem:[%s2818_s6] sm:$0xff] }
 0x51a   :  { %v1442_v54 = vpop.f32.mrb[46].mxu1 }
 0x51b   :  { %v2238_v55 = vpop.f32.mrb[47].mxu1  ;;  %v1765_v54 = vsub.s32 1, %v2767_v53 }
 0x51c   :  { %v1485_v57 = vpop.f32.mrb[48].mxu0 }
 0x51d   :  { %v1723_v58 = vadd.f32 %v1721_v49, %v1485_v57  ;;  %v2243_v59 = vpop.f32.mrb[49].mxu0  ;;  %v1760_v49 = vrot.slane %v2773_v46, %v1759_v45  ;;  %v1766_v16 = vrot.slane %v2773_v46, %v1765_v54 }
 0x51e   :  { %v1488_v60 = vpop.f32.mrb[50].mxu0 }
 0x51f   :  { %v2244_v61 = vpop.f32.mrb[51].mxu0 }
 0x520   :  { %v1531_v62 = vpop.f32.mrb[48].mxu1 }
 0x521   :  { %v1725_v63 = vadd.f32 %v1723_v58, %v1531_v62  ;;  %v2249_v1 = vpop.f32.mrb[49].mxu1 }
 0x522   :  { %v1534_v2 = vpop.f32.mrb[50].mxu1  ;;  %v2321_v1 = vld [vmem:[%s2817_s5 + $0x18] sm:$0xff]  }
 0x523   :  { %v2250_v3 = vpop.f32.mrb[51].mxu1  ;;  %v1728_v4 = vadd.f32 %v1725_v63, %v2453_v0  ;;  %v2320_v63 = vld [vmem:[%s2817_s5 + $0x10] sm:$0xff]   ;;  %v1776_v2 = vsub.s32 2, %v2767_v53  ;;  %s2404_s5 = smov [#allocation4]  }
 0x524   :  { %v1577_v5 = vpop.f32.mrb[52].mxu0  ;;  %2288 = vmatpush3.bf16.msra.mxu1 %v2320_v63  ;;  %s1965_s13 = sshll.u32 %s2404_s5, 4  ;;  %s1966_s13 = int_to_ptr.vmem [resolvable:$true] %s1965_s13 }
 0x525   :  { %v2255_v6 = vpop.f32.mrb[53].mxu0  ;;  %v1730_v7 = vsel %vm91_vm0, %v1728_v4, 0.0  ;;  %2289 = vmatprep.subr.bf16.mxu1 %v2402_v17  ;;  %v1777_v3 = vrot.slane %v2773_v46, %v1776_v2  ;;  %v1847_v17 = vsub.s32 3, %v2767_v53  ;;  %s2375_s14 = scalar_lea.vmem %s1966_s13, 256  ;;  %p2380_p6 = scmp.lt.s32.totalorder %s1966_s13, %s1966_s13 }
 0x526   :  { %v1580_v8 = vpop.f32.mrb[54].mxu0  ;;  %1731 = vadd.xlane.f32.xlu0 %v1730_v7  ;;  %p2376_p5 = scmp.ne.s32.totalorder %s1966_s13, %s2375_s14  ;;  %p2381_p7 = scmp.lt.s32.totalorder %s2375_s14, %s2375_s14 }
 0x527   :  { %v2256_v9 = vpop.f32.mrb[55].mxu0 }
 0x528   :  { %v1623_v10 = vpop.f32.mrb[52].mxu1  ;;  %2290 = vmatpush3.bf16.msra.mxu1 %v2321_v1  ;;  %p2382_p8 = por %p2381_p7, %p2380_p6 }
 0x529   :  { %v1722_v11 = vadd.f32 %v1623_v10, %v1577_v5  ;;  %v2261_v12 = vpop.f32.mrb[53].mxu1 }
 0x52a   :  { %v1626_v13 = vpop.f32.mrb[54].mxu1  ;;  %p2383_p9 = pnand %p2382_p8, %p2376_p5 }
 0x52b   :  { %v2262_v14 = vpop.f32.mrb[55].mxu1  ;;  %v1848_v13 = vrot.slane %v2773_v46, %v1847_v17 }
 0x52c   :  { %v1669_v15 = vpop.f32.mrb[56].mxu0 }
 0x52d   :  { %v1724_v18 = vadd.f32 %v1722_v11, %v1669_v15  ;;  %v2267_v19 = vpop.f32.mrb[57].mxu0 }
 0x52e   :  { %v1672_v20 = vpop.f32.mrb[58].mxu0 }
 0x52f   :  { %v2268_v21 = vpop.f32.mrb[59].mxu0 }
 0x530   :  { %v1715_v47 = vpop.f32.mrb[56].mxu1 }
 0x531   :  { %v1726_v22 = vadd.f32 %v1724_v18, %v1715_v47  ;;  %v2273_v0 = vpop.f32.mrb[57].mxu1 }
 0x532   :  { %v1718_v23 = vpop.f32.mrb[58].mxu1 }
 0x533   :  { %v2274_v24 = vpop.f32.mrb[59].mxu1  ;;  %v1729_v52 = vadd.f32 %v2362_v25, %v1726_v22 }
 0x535   :  { %v1733_v27 = vsel %vm91_vm0, %v1729_v52, 0.0 }
 0x536   :  { %1734 = vadd.xlane.f32.xlu1 %v1733_v27 }
 0x5b3   :  { %v1732_v28 = vpop.xlane.xlu0 %1731 }
 0x5b4   :  { %v1737_v29 = vmul.f32 0.03125, %v1732_v28 }
 0x5b6   :  { %v1739_v30 = vsub.f32 %v1728_v4, %v1737_v29 }
 0x5b8   :  { %v1741_v31 = vmul.f32 %v1739_v30, %v1739_v30 }
 0x5ba   :  { %v1743_v51 = vsel %vm91_vm0, %v1741_v31, 0.0 }
 0x5bb   :  { %1744 = vadd.xlane.f32.xlu0 %v1743_v51 }
 0x5c3   :  { %v1735_v32 = vpop.xlane.xlu1 %1734 }
 0x5c4   :  { %v1738_v34 = vmul.f32 0.03125, %v1735_v32 }
 0x5c6   :  { %v1740_v35 = vsub.f32 %v1729_v52, %v1738_v34 }
 0x5c8   :  { %v1742_v36 = vmul.f32 %v1740_v35, %v1740_v35 }
 0x5ca   :  { %v1746_v37 = vsel %vm91_vm0, %v1742_v36, 0.0 }
 0x5cb   :  { %1747 = vadd.xlane.f32.xlu1 %v1746_v37 }
 0x648   :  { %v1745_v48 = vpop.xlane.xlu0 %1744 }
 0x649   :  { %v1749_v42 = vmul.f32 0.03125, %v1745_v48  ;;  %v1949_v48 = vrot.slane %v2773_v46, %v1948_v39 }
 0x64b   :  { %v1751_v26 = vadd.f32 1e-05, %v1749_v42 }
 0x64d   :  { %2354 = vrsqrt.f32 %v1751_v26 }
 0x657   :  { %v2355_v40 = vpop.eup %2354 }
 0x658   :  { %v1748_v43 = vpop.xlane.xlu1 %1747  ;;  %v1755_v50 = vmul.f32 %v2355_v40, %v1739_v30 }
 0x659   :  { %v1750_v44 = vmul.f32 0.03125, %v1748_v43  ;;  %v1955_v43 = vrot.slane %v2773_v46, %v1954_v41 }
 0x65a   :  { %v1761_v57 = vmul.f32 %v1760_v49, %v1755_v50 }
 0x65b   :  { %v1752_v33 = vadd.f32 1e-05, %v1750_v44 }
 0x65c   :  { %v1767_v60 = vadd.f32 %v1766_v16, %v1761_v57 }
 0x65d   :  { %2356 = vrsqrt.f32 %v1752_v33 }
 0x667   :  { %v2357_v55 = vpop.eup %2356 }
 0x668   :  { %v1756_v58 = vmul.f32 %v2357_v55, %v1740_v35 }
 0x66a   :  { %v1762_v59 = vmul.f32 %v1760_v49, %v1756_v58 }
 0x66c   :  { %v1768_v61 = vadd.f32 %v1766_v16, %v1762_v59 }
 0x66e   :  { %v1769_v62 = vpack.c.bf16 %v1768_v61, %v1767_v60 }
 0x670   :  { %2280 = vmatmul.mubr.msk.bf16.vlgmr.msra.gmra.mrb[60].mxu0 %vm91_vm0, %v1769_v62 }
 0x743   :  { %v1827_v4 = vpop.f32.mrb[60].mxu0 }
 0x744   :  { %v1828_v5 = vadd.f32 %v1827_v4, %v1777_v3  ;;  %v2281_v6 = vpop.f32.mrb[61].mxu0 }
 0x745   :  { %v1830_v7 = vpop.f32.mrb[62].mxu0 }
 0x746   :  { %v1831_v8 = vadd.f32 %v1830_v7, %v1777_v3  ;;  %v2282_v9 = vpop.f32.mrb[63].mxu0  ;;  %v1834_v10 = vmax.f32 %v1828_v5, 0.0 }
 0x748   :  { %v1835_v11 = vmax.f32 %v1831_v8, 0.0 }
 0x74a   :  { %v1836_v12 = vpack.c.bf16 %v1835_v11, %v1834_v10 }
 0x74c   :  { %2292 = vmatmul.mubr.msk.bf16.vlgmr.msra.gmra.mrb[60].mxu1 %vm1873_vm6, %v1836_v12 }
 0x81f   :  { %v1911_v14 = vpop.f32.mrb[60].mxu1 }
 0x820   :  { %v1912_v15 = vadd.f32 %v1911_v14, %v1848_v13  ;;  %v2293_v18 = vpop.f32.mrb[61].mxu1 }
 0x821   :  { %v1914_v19 = vpop.f32.mrb[62].mxu1 }
 0x822   :  { %v1915_v20 = vadd.f32 %v1914_v19, %v1848_v13  ;;  %v2294_v21 = vpop.f32.mrb[63].mxu1  ;;  %v1918_v47 = vadd.f32 %v1912_v15, %v1767_v60 }
 0x824   :  { %v1920_v22 = vsel %vm91_vm0, %v1918_v47, 0.0  ;;  %v1919_v0 = vadd.f32 %v1915_v20, %v1768_v61 }
 0x825   :  { %1921 = vadd.xlane.f32.xlu0 %v1920_v22 }
 0x826   :  { %v1923_v23 = vsel %vm91_vm0, %v1919_v0, 0.0 }
 0x827   :  { %1924 = vadd.xlane.f32.xlu1 %v1923_v23 }
 0x8b2   :  { %v1922_v24 = vpop.xlane.xlu0 %1921 }
 0x8b3   :  { %v1926_v25 = vmul.f32 0.03125, %v1922_v24 }
 0x8b4   :  { %v1925_v52 = vpop.xlane.xlu1 %1924 }
 0x8b5   :  { %v1928_v27 = vsub.f32 %v1918_v47, %v1926_v25  ;;  %v1927_v28 = vmul.f32 0.03125, %v1925_v52 }
 0x8b7   :  { %v1929_v29 = vsub.f32 %v1919_v0, %v1927_v28  ;;  %v1930_v30 = vmul.f32 %v1928_v27, %v1928_v27 }
 0x8b9   :  { %v1932_v31 = vsel %vm91_vm0, %v1930_v30, 0.0  ;;  %v1931_v51 = vmul.f32 %v1929_v29, %v1929_v29 }
 0x8ba   :  { %1933 = vadd.xlane.f32.xlu0 %v1932_v31 }
 0x8bb   :  { %v1935_v32 = vsel %vm91_vm0, %v1931_v51, 0.0 }
 0x8bc   :  { %1936 = vadd.xlane.f32.xlu1 %v1935_v32 }
 0x947   :  { %v1934_v34 = vpop.xlane.xlu0 %1933 }
 0x948   :  { %v1938_v35 = vmul.f32 0.03125, %v1934_v34 }
 0x949   :  { %v1937_v36 = vpop.xlane.xlu1 %1936 }
 0x94a   :  { %v1940_v37 = vadd.f32 1e-05, %v1938_v35  ;;  %v1939_v56 = vmul.f32 0.03125, %v1937_v36 }
 0x94c   :  { %2358 = vrsqrt.f32 %v1940_v37  ;;  %v1941_v38 = vadd.f32 1e-05, %v1939_v56 }
 0x94e   :  { %2360 = vrsqrt.f32 %v1941_v38 }
 0x956   :  { %v2359_v42 = vpop.eup %2358 }
 0x957   :  { %v1944_v26 = vmul.f32 %v2359_v42, %v1928_v27 }
 0x958   :  { %v2361_v44 = vpop.eup %2360 }
 0x959   :  { %v1945_v33 = vmul.f32 %v2361_v44, %v1929_v29  ;;  %v1950_v45 = vmul.f32 %v1949_v48, %v1944_v26 }
 0x95b   :  { %v1951_v40 = vmul.f32 %v1949_v48, %v1945_v33  ;;  %v1956_v49 = vadd.f32 %v1955_v43, %v1950_v45 }
 0x95d   :  { %v1957_v50 = vadd.f32 %v1955_v43, %v1951_v40  ;;  %1958 = vst.msk [vmem:[#allocation4] sm:$0xff] %vm91_vm0, %v1956_v49 }
 0x95f   :  { %1959 = vst.msk [vmem:[#allocation4 + $0x8] sm:$0xff] %vm91_vm0, %v1957_v50 }
 0x960   :  { %2386 = shalt.err (!%p2383_p9)
}
 0x961   :  { %s2387_s17 = scalar_lea.hbm %s2819_s7, 256 }
 0x962   :  { %p2388_p10 = scmp.ne.s32.totalorder %s2819_s7, %s2387_s17  ;;  %p2391_p11 = scmp.lt.u32.totalorder %s2387_s17, %s2819_s7 }
 0x964   :  { %p2393_p12 = pnand %p2391_p11, %p2388_p10 }
 0x966   :  { %2396 = shalt.err (!%p2393_p12)
}
 0x967   :  { %s2405_s22 = smov 128   ;;  %s2406_s23 = smov 8  }
 0x968   :  { %1971 = dma.vmem_to_hbm [thread:$0]  %s1966_s13, 256, %s2819_s7, [#allocation5], %s2405_s22, %s2405_s22, %s2406_s23  }
 0x969   :  { %2399 = dma.done.wait [#allocation5], 256  }
 0x96a   :  { %2400 = vsyncadd [#allocation5], 4294967040 }
 0x96b   :  { %1975 = vsyncpa [#allocation5], 1 }

</bundles_post_ra>
